<compile_context>
chip_gen: v7x
topology: tpu7x:2x2x1
jax: 0.10.0
libtpu: 0.0.40
codegen_flags: <defaults>
</compile_context>

<pallas_src>
import jax
import jax.numpy as jnp
from jax import lax
from jax.experimental import pallas as pl
from jax.experimental.pallas import tpu as pltpu


# ---------------------------- helpers ----------------------------

def _deconv_out_size(n, kernel, stride, pad):
    return (n - 1) * stride - 2 * pad + kernel


def _round_up(n, m):
    return ((n + m - 1) // m) * m


def _build_map_t(h_in, w_in, h_out, w_out, kk, stride, pad, w):
    """M^T[j, o] = w[kh, kw], kh = oh + pad - ih*stride, kw = ow + pad - iw*stride.

    Built in the wrapper (plain XLA), NOT inside the Pallas kernel.
    """
    j = jnp.arange(h_in * w_in, dtype=jnp.int32)
    o = jnp.arange(h_out * w_out, dtype=jnp.int32)
    ih, iw = j // w_in, j % w_in
    oh, ow = o // w_out, o % w_out
    kh = oh[None, :] + pad - ih[:, None] * stride
    kw = ow[None, :] + pad - iw[:, None] * stride
    valid = (kh >= 0) & (kh < kk) & (kw >= 0) & (kw < kk)
    vals = w[jnp.clip(kh, 0, kk - 1), jnp.clip(kw, 0, kk - 1)]
    return jnp.where(valid, vals, 0.0).astype(jnp.float32)


def _vmem_cap_bytes():
    try:
        return int(pltpu.get_tpu_info().vmem_capacity_bytes)
    except Exception:
        return 64 << 20          # conservative (v7x physical per-TC VMEM)


def _vmem_budget():
    return (_vmem_cap_bytes() * 3) // 4


def _vmem_limit(resident_bytes):
    need = int(resident_bytes) + (4 << 20)
    return int(min(_vmem_budget(), max(need, 32 << 20)))


def _pick_tile(total_pad, resident_fn, budget):
    """Largest lane-dense (multiple of 128) column tile dividing total_pad that
    fits the VMEM budget, preferring >=4 grid steps (megacore + pipelining)."""
    cands = [t for t in (2048, 1024, 512, 256, 128)
             if t <= total_pad and total_pad % t == 0]
    if not cands:
        return total_pad
    for min_tiles in (4, 2, 1):
        for t in cands:
            if total_pad // t >= min_tiles and resident_fn(t) <= budget:
                return t
    return cands[-1]


def _largest_div_le(total, cap):
    for c in (4096, 2048, 1024, 512, 256, 128):
        if c <= cap and total % c == 0:
            return c
    return 128


# ---------------------------- kernels ----------------------------

def _make_mid_kernel(l):
    def kernel(*refs):
        scal_ref = refs[0]                  # SMEM (2,) f32: [cw0, bias_mid]
        x_ref = refs[1]                     # (N, tile_hw) f32
        xi_refs = refs[2:2 + l]             # (N, hi*wi) bf16
        mt_refs = refs[2 + l:2 + 2 * l]     # (hi*wi, tile_hw) bf16 (cw-folded)
        out_ref = refs[2 + 2 * l]           # (N, tile_hw) bf16 / f32

        mid = x_ref[...] * scal_ref[0] + scal_ref[1]
        for i in range(l):
            mid = mid + jnp.dot(xi_refs[i][...], mt_refs[i][...],
                                preferred_element_type=jnp.float32)
        out_ref[...] = mid.astype(out_ref.dtype)
    return kernel


def _deconv_kernel(scal_ref, mid_ref, mdt_ref, out_ref):
    # grid = (HoWo tiles [parallel], HW reduction tiles [arbitrary, last]).
    # The output block index is independent of the reduction axis, so it stays
    # resident in VMEM and is used directly as the f32 accumulator.
    @pl.when(pl.program_id(1) == 0)
    def _():
        out_ref[...] = jnp.zeros_like(out_ref) + scal_ref[0]   # bias bd

    out_ref[...] += jnp.dot(mid_ref[...], mdt_ref[...],
                            preferred_element_type=jnp.float32)


# ---------------------------- wrapper ----------------------------

def concat_layer_2_pallas(x, list_x, params, list_k, k, scale=True):
    """Pallas forward of ConcatLayer_2. x: (N,1,H,W); list_x[i]: (N,1,h_i,w_i)."""
    N, C, H, W = x.shape
    assert C == 1
    l = len(list_x)
    assert l == len(list_k)
    HW = H * W
    in_shapes = [(int(xi.shape[2]), int(xi.shape[3])) for xi in list_x]
    for (hi, wi), ki in zip(in_shapes, list_k):
        assert _deconv_out_size(hi, ki, ki // 2, ki // 4) == H
        assert _deconv_out_size(wi, ki, ki // 2, ki // 4) == W

    HW_pad = _round_up(HW, 128)
    cw = params["cw"]
    budget = _vmem_budget()

    # cw-folded scatter maps (bf16 MXU operands), zero-padded to HW_pad columns.
    mts = []
    for i, ((hi, wi), ki) in enumerate(zip(in_shapes, list_k)):
        mt = _build_map_t(hi, wi, H, W, ki, ki // 2, ki // 4, params["up_w"][i])
        mt = (cw[i + 1] * mt).astype(jnp.bfloat16)
        mts.append(jnp.pad(mt, ((0, 0), (0, HW_pad - HW))))
    bias_mid = params["cb"][0] + sum(cw[i + 1] * params["up_b"][i] for i in range(l))
    scal_mid = jnp.stack([cw[0].astype(jnp.float32), bias_mid.astype(jnp.float32)])

    x_flat = jnp.pad(x.reshape(N, HW).astype(jnp.float32),
                     ((0, 0), (0, HW_pad - HW)))
    xi_flat = [xi.reshape(N, hi * wi).astype(jnp.bfloat16)
               for xi, (hi, wi) in zip(list_x, in_shapes)]

    # ---- kernel A: mid (computed exactly once, column-tiled over HW) ----
    mid_dtype = jnp.bfloat16 if scale else jnp.float32
    mid_isz = jnp.dtype(mid_dtype).itemsize

    def resident_mid(t):
        r = 2 * N * t * 4 + 2 * N * t * mid_isz
        for (hi, wi) in in_shapes:
            r += 2 * N * hi * wi * 2 + 2 * hi * wi * t * 2
        return r

    tile_hw = _pick_tile(HW_pad, resident_mid, budget)
    grid_a = (HW_pad // tile_hw,)

    in_specs_a = (
        [pl.BlockSpec(memory_space=pltpu.MemorySpace.SMEM),
         pl.BlockSpec((N, tile_hw), lambda j: (0, j))]
        + [pl.BlockSpec((N, hi * wi), lambda j: (0, 0)) for (hi, wi) in in_shapes]
        + [pl.BlockSpec((hi * wi, tile_hw), lambda j: (0, j))
           for (hi, wi) in in_shapes])

    mid = pl.pallas_call(
        _make_mid_kernel(l),
        out_shape=jax.ShapeDtypeStruct((N, HW_pad), mid_dtype),
        grid=grid_a,
        in_specs=in_specs_a,
        out_specs=pl.BlockSpec((N, tile_hw), lambda j: (0, j)),
        compiler_params=pltpu.CompilerParams(
            dimension_semantics=("parallel",),
            vmem_limit_bytes=_vmem_limit(resident_mid(tile_hw))),
    )(scal_mid, x_flat, *xi_flat, *mts)

    if not scale:
        return mid[:, :HW].reshape(N, 1, H, W)

    # ---- kernel B: final deconv (kernel 2k, stride k, pad k//2) ----
    kd, sd, pd = 2 * k, k, k // 2
    Ho = _deconv_out_size(H, kd, sd, pd)
    Wo = _deconv_out_size(W, kd, sd, pd)
    HoWo = Ho * Wo
    HoWo_pad = _round_up(HoWo, 128)

    mdt = _build_map_t(H, W, Ho, Wo, kd, sd, pd, params["wd"]).astype(jnp.bfloat16)
    mdt = jnp.pad(mdt, ((0, HW_pad - HW), (0, HoWo_pad - HoWo)))
    scal_d = params["bd"].reshape(1).astype(jnp.float32)

    # TODO(synk): also tile the HW (K) axis of kernel A's maps for very large
    # inputs; here only kernel B (K = HW, the biggest map) gets K tiling.
    tile_k = HW_pad if HW_pad <= 2048 else _largest_div_le(HW_pad, 2048)
    n_k = HW_pad // tile_k

    def resident_dec(t_o, nbuf=3):
        return (2 * N * tile_k * 2            # mid column block (bf16)
                + nbuf * tile_k * t_o * 2     # streamed mdt slab (bf16)
                + 2 * N * t_o * 4)            # resident output accumulator (f32)

    tile_o = _pick_tile(HoWo_pad, lambda t: resident_dec(t, 3), budget)
    n_o = HoWo_pad // tile_o

    # Deepen mdt pipelining when per-step compute is tiny and VMEM allows.
    mdt_buffers = 3 if (n_o * n_k >= 3 and resident_dec(tile_o, 3) <= budget) else 2
    mdt_spec = pl.BlockSpec((tile_k, tile_o), lambda j, kk: (kk, j),
                            pipeline_mode=pl.Buffered(mdt_buffers))

    out_flat = pl.pallas_call(
        _deconv_kernel,
        out_shape=jax.ShapeDtypeStruct((N, HoWo_pad), jnp.float32),
        grid=(n_o, n_k),
        in_specs=[pl.BlockSpec(memory_space=pltpu.MemorySpace.SMEM),
                  pl.BlockSpec((N, tile_k), lambda j, kk: (0, kk)),
                  mdt_spec],
        out_specs=pl.BlockSpec((N, tile_o), lambda j, kk: (0, j)),
        compiler_params=pltpu.CompilerParams(
            dimension_semantics=("parallel", "arbitrary"),
            vmem_limit_bytes=_vmem_limit(resident_dec(tile_o, mdt_buffers))),
    )(scal_d, mid, mdt)

    return out_flat[:, :HoWo].reshape(N, 1, Ho, Wo)


# ---------------- pure-JAX reference (PyTorch semantics) ----------------

def _conv_transpose_nchw(x, w, b, stride, pad):
    # x: (N,1,h,w); w: (in=1,out=1,k,k) PyTorch ConvTranspose2d layout.
    kk = w.shape[-1]
    w_flip = w[:, :, ::-1, ::-1]
    w_oihw = jnp.transpose(w_flip, (1, 0, 2, 3))
    y = lax.conv_general_dilated(
        x, w_oihw, window_strides=(1, 1),
        padding=[(kk - 1 - pad, kk - 1 - pad)] * 2,
        lhs_dilation=(stride, stride),
        dimension_numbers=("NCHW", "OIHW", "NCHW"))
    return y + b.reshape(1, -1, 1, 1)


def ref_forward(x, list_x, params, list_k, k, scale=True):
    elems = [x]
    for i, xi in enumerate(list_x):
        ki = list_k[i]
        w = params["up_w"][i].reshape(1, 1, ki, ki)
        b = params["up_b"][i].reshape(1)
        elems.append(_conv_transpose_nchw(xi, w, b, ki // 2, ki // 4))
    cat = jnp.concatenate(elems, axis=1)                       # (N, l+1, H, W)
    mid = jnp.einsum("nchw,c->nhw", cat, params["cw"])[:, None, :, :]
    mid = mid + params["cb"].reshape(1, 1, 1, 1)
    if scale:
        wd = params["wd"].reshape(1, 1, 2 * k, 2 * k)
        return _conv_transpose_nchw(mid, wd, params["bd"], k, k // 2)
    return mid


def init_params(key, list_k, k, scale=True):
    l = len(list_k)
    keys = jax.random.split(key, l + 5)
    params = {
        "up_w": [0.1 * jax.random.normal(keys[i], (ki, ki), jnp.float32)
                 for i, ki in enumerate(list_k)],
        "up_b": 0.1 * jax.random.normal(keys[l], (l,), jnp.float32),
        "cw": 0.5 * jax.random.normal(keys[l + 1], (l + 1,), jnp.float32),
        "cb": 0.1 * jax.random.normal(keys[l + 2], (1,), jnp.float32),
    }
    if scale:
        params["wd"] = 0.1 * jax.random.normal(keys[l + 3], (2 * k, 2 * k), jnp.float32)
        params["bd"] = 0.1 * jax.random.normal(keys[l + 4], (1,), jnp.float32)
    return params


if __name__ == "__main__":
    key = jax.random.PRNGKey(0)
    list_k = [4, 8]          # upconv kernel sizes -> upsample factors 2x and 4x
    k = 2                    # deconv: kernel 4, stride 2, pad 1 -> 2x upsample
    N, H, W = 2, 16, 16

    k_x, k_x0, k_x1, k_p = jax.random.split(key, 4)
    x = jax.random.normal(k_x, (N, 1, H, W), jnp.float32)
    list_x = [jax.random.normal(k_x0, (N, 1, 8, 8), jnp.float32),   # 4//2=2x -> 16
              jax.random.normal(k_x1, (N, 1, 4, 4), jnp.float32)]   # 8//2=4x -> 16
    params = init_params(k_p, list_k, k, scale=True)

    out = concat_layer_2_pallas(x, list_x, params, list_k, k, scale=True)
    out = jax.block_until_ready(out)
    ref = ref_forward(x, list_x, params, list_k, k, scale=True)
    assert out.shape == ref.shape == (N, 1, H * k, W * k), (out.shape, ref.shape)
    # bf16 MXU operands -> relaxed tolerance
    if not jnp.allclose(out, ref, atol=2e-2, rtol=2e-2):
        raise AssertionError(
            f"scale=True mismatch, max abs err = {jnp.max(jnp.abs(out - ref))}")

    # also exercise the scale=False path
    params_ns = init_params(jax.random.PRNGKey(1), list_k, k, scale=False)
    out2 = concat_layer_2_pallas(x, list_x, params_ns, list_k, k, scale=False)
    out2 = jax.block_until_ready(out2)
    ref2 = ref_forward(x, list_x, params_ns, list_k, k, scale=False)
    if not jnp.allclose(out2, ref2, atol=2e-2, rtol=2e-2):
        raise AssertionError(
            f"scale=False mismatch, max abs err = {jnp.max(jnp.abs(out2 - ref2))}")

    print("KERNEL_OK")
</pallas_src>

<mosaic_0001>
module attributes {stable_mosaic.version = 11 : i64} {
  func.func @kernel(%arg0: i32, %arg1: memref<2xf32, #tpu.memory_space<smem>>, %arg2: memref<2x128xf32, #tpu.memory_space<vmem>>, %arg3: memref<2x64xbf16, #tpu.memory_space<vmem>>, %arg4: memref<2x16xbf16, #tpu.memory_space<vmem>>, %arg5: memref<64x128xbf16, #tpu.memory_space<vmem>>, %arg6: memref<16x128xbf16, #tpu.memory_space<vmem>>, %arg7: memref<2x128xbf16, #tpu.memory_space<vmem>>) attributes {dimension_semantics = [#tpu.dimension_semantics<parallel>], iteration_bounds = array<i64: 2>, scalar_prefetch = 0 : i64, scratch_operands = 0 : i64, tpu.core_type = #tpu.core_type<tc>, window_params = [{transform_indices = @transform_0, window_bounds = array<i64: 2>}, {transform_indices = @transform_1, window_bounds = array<i64: 2, 128>}, {pipeline_mode = #tpu.pipeline_mode<synchronous>, transform_indices = @transform_2, window_bounds = array<i64: 2, 64>}, {pipeline_mode = #tpu.pipeline_mode<synchronous>, transform_indices = @transform_3, window_bounds = array<i64: 2, 16>}, {transform_indices = @transform_4, window_bounds = array<i64: 64, 128>}, {transform_indices = @transform_5, window_bounds = array<i64: 16, 128>}, {transform_indices = @transform_6, window_bounds = array<i64: 2, 128>}]} {
    %c0 = arith.constant 0 : index
    %c0_0 = arith.constant 0 : index
    %0 = vector.load %arg2[%c0, %c0_0] : memref<2x128xf32, #tpu.memory_space<vmem>>, vector<2x128xf32>
    %c0_1 = arith.constant 0 : index
    %1 = memref.load %arg1[%c0_1] : memref<2xf32, #tpu.memory_space<smem>>
    %2 = vector.broadcast %1 : f32 to vector<2x128xf32>
    %3 = arith.mulf %0, %2 : vector<2x128xf32>
    %c1 = arith.constant 1 : index
    %4 = memref.load %arg1[%c1] : memref<2xf32, #tpu.memory_space<smem>>
    %5 = vector.broadcast %4 : f32 to vector<2x128xf32>
    %6 = arith.addf %3, %5 : vector<2x128xf32>
    %c0_2 = arith.constant 0 : index
    %c0_3 = arith.constant 0 : index
    %7 = vector.load %arg3[%c0_2, %c0_3] : memref<2x64xbf16, #tpu.memory_space<vmem>>, vector<2x64xbf16>
    %c0_4 = arith.constant 0 : index
    %c0_5 = arith.constant 0 : index
    %8 = vector.load %arg5[%c0_4, %c0_5] : memref<64x128xbf16, #tpu.memory_space<vmem>>, vector<64x128xbf16>
    %cst = arith.constant dense<0.000000e+00> : vector<2x128xf32>
    %9 = tpu.matmul %7, %8, %cst {dimension_numbers = #tpu.dot_dimension_numbers<[1], [0], [0], [1], [0, 0, 1, 1], [], []>} : vector<2x64xbf16>, vector<64x128xbf16>, vector<2x128xf32> -> vector<2x128xf32>
    %10 = arith.addf %6, %9 : vector<2x128xf32>
    %c0_6 = arith.constant 0 : index
    %c0_7 = arith.constant 0 : index
    %11 = vector.load %arg4[%c0_6, %c0_7] : memref<2x16xbf16, #tpu.memory_space<vmem>>, vector<2x16xbf16>
    %c0_8 = arith.constant 0 : index
    %c0_9 = arith.constant 0 : index
    %12 = vector.load %arg6[%c0_8, %c0_9] : memref<16x128xbf16, #tpu.memory_space<vmem>>, vector<16x128xbf16>
    %cst_10 = arith.constant dense<0.000000e+00> : vector<2x128xf32>
    %13 = tpu.matmul %11, %12, %cst_10 {dimension_numbers = #tpu.dot_dimension_numbers<[1], [0], [0], [1], [0, 0, 1, 1], [], []>} : vector<2x16xbf16>, vector<16x128xbf16>, vector<2x128xf32> -> vector<2x128xf32>
    %14 = arith.addf %10, %13 : vector<2x128xf32>
    %15 = arith.truncf %14 : vector<2x128xf32> to vector<2x128xbf16>
    %c0_11 = arith.constant 0 : index
    %c0_12 = arith.constant 0 : index
    %16 = vector.load %arg7[%c0_11, %c0_12] : memref<2x128xbf16, #tpu.memory_space<vmem>>, vector<2x128xbf16>
    tpu.vector_store %arg7[%c0_11, %c0_12], %15 {strides = array<i32>} : memref<2x128xbf16, #tpu.memory_space<vmem>>, vector<2x128xbf16>,
    return
  }
  func.func @transform_0(%arg0: i32) -> i32 {
    %c0_i32 = arith.constant 0 : i32
    %c0_i32_0 = arith.constant 0 : i32
    return %c0_i32 : i32
  }
  func.func @transform_1(%arg0: i32) -> (i32, i32) {
    %c0_i32 = arith.constant 0 : i32
    %c0_i32_0 = arith.constant 0 : i32
    return %c0_i32, %arg0 : i32, i32
  }
  func.func @transform_2(%arg0: i32) -> (i32, i32) {
    %c0_i32 = arith.constant 0 : i32
    %c0_i32_0 = arith.constant 0 : i32
    %c0_i32_1 = arith.constant 0 : i32
    return %c0_i32, %c0_i32_0 : i32, i32
  }
  func.func @transform_3(%arg0: i32) -> (i32, i32) {
    %c0_i32 = arith.constant 0 : i32
    %c0_i32_0 = arith.constant 0 : i32
    %c0_i32_1 = arith.constant 0 : i32
    return %c0_i32, %c0_i32_0 : i32, i32
  }
  func.func @transform_4(%arg0: i32) -> (i32, i32) {
    %c0_i32 = arith.constant 0 : i32
    %c0_i32_0 = arith.constant 0 : i32
    return %c0_i32, %arg0 : i32, i32
  }
  func.func @transform_5(%arg0: i32) -> (i32, i32) {
    %c0_i32 = arith.constant 0 : i32
    %c0_i32_0 = arith.constant 0 : i32
    return %c0_i32, %arg0 : i32, i32
  }
  func.func @transform_6(%arg0: i32) -> (i32, i32) {
    %c0_i32 = arith.constant 0 : i32
    %c0_i32_0 = arith.constant 0 : i32
    return %c0_i32, %arg0 : i32, i32
  }
}

</mosaic_0001>

<bundles_post_ra>
// kernel: tpu_custom_call.1
= control target key start
LH: loop header
LB: loop body
LE: loop exit
PB: predicated region body
PF: predicated region fallthrough
CT: control target
= control target key end

     0   :  { %s1201_s0 = inlined_call_operand.hbm [shape: f32[2], index: 0, kind: input, shape index: {}]   ;;  %s1202_s1 = inlined_call_operand.hbm [shape: f32[2,256], index: 1, kind: input, shape index: {}]   ;;  %s1203_s2 = inlined_call_operand.vmem [shape: bf16[2,64], index: 2, kind: input, shape index: {}]   ;;  %s1204_s3 = inlined_call_operand.vmem [shape: bf16[2,16], index: 3, kind: input, shape index: {}]   ;;  %s1205_s4 = inlined_call_operand.hbm [shape: bf16[64,256], index: 4, kind: input, shape index: {}]   ;;  %s1206_s5 = inlined_call_operand.vmem [shape: bf16[16,256], index: 5, kind: input, shape index: {}]   ;;  %s1207_s6 = inlined_call_operand.hbm [shape: bf16[2,256], index: 6, kind: output, shape index: {}]  }
   0x1   :  { %1212 = sst [smem:[#allocation15_spill]] %s1201_s0 }
   0x2   :  { %11 = vsyncpa [#allocation5], 0 }
   0x3   :  { %12 = vsyncpa [#allocation3], 0 }
   0x4   :  { %14 = vsyncpa [#allocation3 + $0x1], 0 }
   0x5   :  { %15 = vsyncpa [#allocation8], 0 }
   0x6   :  { %17 = vsyncpa [#allocation8 + $0x1], 0 }
   0x7   :  { %18 = vsyncpa [#allocation4], 0 }
   0x8   :  { %20 = vsyncpa [#allocation4 + $0x1], 0  ;;  %s962_s21 = smov 0   ;;  %s964_s22 = smov 0  }
   0x9   :  { %s966_s23 = smov 0   ;;  %s968_s24 = smov 0  }
   0xa LB: > { %s983_s25 = sadd.s32 4294967295, %s916_s24   ;;  %s656_s26 = sadd.s32 4294967294, %s916_s24   ;;  %s916_s24 = sphi %s968_s24, %s1228_s24   ;;  %s912_s23 = sphi %s966_s23, %s1227_s23   ;;  %s908_s22 = sphi %s964_s22, %s1226_s22   ;;  %s904_s21 = sphi %s962_s21, %s1225_s21  }
   0xb   : > { %s987_s27 = sadd.s32 1, %s916_s24   ;;  %s54_s28 = sadd.s32 1, %s912_s23 }
   0xc   : > { %s51_s29 = ssub.s32 %s916_s24, %s987_s27  ;;  %p61_p0 = scmp.ne.s32.totalorder %s912_s23, %s908_s22 }
   0xd   : > { %p52_p1 = scmp.eq.s32.totalorder %s51_s29, 0  ;;  %p62_p2 = scmp.eq.s32.totalorder %s916_s24, 0 }
   0xe   : > { %p67_p3 = scmp.ne.s32.totalorder %s908_s22, %s904_s21  ;;  %p1209_p4 = scmp.eq.s32.totalorder %s983_s25, 0 }
   0xf   : > { %s999_s30 = scalar_select %p52_p1, %s912_s23, %s54_s28  }
  0x10   : > { %p1001_p5 = por %p62_p2, %p61_p0  ;;  %p1007_p6 = por %p1209_p4, %p67_p3 }
  0x11   : > { %p185_p7 = scmp.eq.s32.totalorder %s983_s25, 1  ;;  %p191_p8 = scmp.eq.s32.totalorder %s656_s26, 1 }
  0x12   : > { %s1214_s8 = scalar_select %p1007_p6, 1, 0 }
  0x13   : > { %p657_p9 = scmp.ge.s32.totalorder %s916_s24, 1  ;;  %p198_p10 = scmp.lt.s32.totalorder %s916_s24, 3 }
  0x14   : > { %p1014_p11 = por %p185_p7, %p61_p0  ;;  %p1018_p12 = por %p191_p8, %p67_p3 }
  0x15   : > { %p1022_p13 = pnand %p657_p9, %p198_p10  ;;  %s1218_s0 = sld [smem:[#allocation15_spill]] }
  0x16   : > { %s1215_s9 = scalar_select %p1014_p11, 1, 0 }
  0x17   : > { %s1216_s10 = scalar_select %p1018_p12, 1, 0 }
  0x18   : > { %p719_p1 = pneg %p1022_p13 }
  0x1a   : > { %p720_p2 = pnand %p719_p1, %p1209_p4 }
  0x1b   : > { %s773_s14 = scalar_lea.hbm %s1218_s0, 16 }
  0x1c   : > { %p774_p0 = scmp.ne.s32.totalorder %s1218_s0, %s773_s14  ;;  %p775_p3 = pneg %p720_p2 }
  0x1d   : > { %p780_p9 = scmp.lt.u32.totalorder %s773_s14, %s1218_s0 }
  0x1e   : > { %p776_p7 = pnand %p775_p3, %p774_p0 }
  0x20   : > { %p777_p8 = pneg %p776_p7 }
  0x22   : > { %p782_p10 = pnand %p780_p9, %p777_p8 }
  0x24   : > { %785 = shalt.err (!%p782_p10)
}
  0x25   : > { %s918_s19 = smov [#allocation2]   ;;  %p1208_p1 = scmp.ge.s32.totalorder %s916_s24, 2 }
  0x26   : > { %722 = dma.hbm_to_smem (!%p720_p2), %s1218_s0, 16, %s918_s19, [#allocation5]  }
  0x27   : > { %222 = sbr.rel (%p1208_p1) target bundleno = 96 (0x60), region = 28  ;;  %s1046_s28 = sand.u32 (!%p1208_p1), 1, %s912_s23  }
  0x28   : > { %s661_s29 = sshll.u32 (!%p1208_p1), %s916_s24, 5  ;;  %s660_s12 = sshll.u32 (!%p1208_p1), %s1046_s28, 1 }
  0x29   : > { %s1053_s15 = scalar_lea.hbm (!%p1208_p1), %s1202_s1, %s661_s29  ;;  %s230_s16 = scalar_lea.vmem (!%p1208_p1), [#allocation6], %s660_s12 }
  0x2a   : > { %s237_s17 = sshll.u32 (!%p1208_p1), %s230_s16, 4  ;;  %s662_s18 = sshll.u32 (!%p1208_p1), %s1046_s28, 5  ;;  %s1055_s17 = int_to_ptr.vmem [resolvable:$true] %s237_s17 }
  0x2b   : > { %s227_s19 = scalar_lea.sflag (!%p1208_p1), [#allocation3], %s1046_s28  ;;  %s786_s20 = scalar_lea.hbm (!%p1208_p1), %s1053_s15, 32 }
  0x2c   : > { %p787_p2 = scmp.ne.s32.totalorder (!%p1208_p1), %s1053_s15, %s786_s20  ;;  %s790_s29 = scalar_lea.hbm (!%p1208_p1), %s1202_s1, 64 }
  0x2d   : > { %p791_p7 = scmp.lt.u32.totalorder (!%p1208_p1), %s1053_s15, %s1202_s1  ;;  %p792_p8 = scmp.lt.u32.totalorder (!%p1208_p1), %s790_s29, %s786_s20 }
  0x2e   : > { %p788_p0 = pnand %p787_p2, %p1001_p5  ;;  %p794_p10 = scmp.lt.u32.totalorder %s786_s20, %s1053_s15 }
  0x2f   : > { %p793_p9 = por %p792_p8, %p791_p7 }
  0x30   : > { %p789_p3 = pneg %p788_p0 }
  0x31   : > { %p795_p1 = por %p794_p10, %p793_p9 }
  0x33   : > { %p796_p4 = pnand %p795_p1, %p789_p3 }
  0x35   : > { %799 = shalt.err (!%p796_p4)
}
  0x36   : > { %s800_s12 = scalar_lea.vmem %s1055_s17, 32  ;;  %s919_s0 = smov [#allocation6]  }
  0x37   : > { %p801_p2 = scmp.ne.s32.totalorder %s1055_s17, %s800_s12  ;;  %s804_s16 = sshll.u32 %s919_s0, 4  ;;  %s805_s16 = int_to_ptr.vmem [resolvable:$false] %s804_s16 }
  0x38   : > { %s806_s26 = scalar_lea.vmem %s805_s16, 64  ;;  %p807_p11 = scmp.lt.s32.totalorder %s1055_s17, %s805_s16 }
  0x39   : > { %p802_p0 = pnand %p801_p2, %p1001_p5  ;;  %p808_p6 = scmp.lt.s32.totalorder %s806_s26, %s800_s12 }
  0x3b   : > { %p803_p12 = pneg %p802_p0  ;;  %p809_p7 = por %p808_p6, %p807_p11 }
  0x3d   : > { %p810_p8 = pnand %p809_p7, %p803_p12 }
  0x3f   : > { %813 = shalt.err (!%p810_p8)
}
  0x40   : > { %711 = dma.hbm_to_vmem [thread:$0]  (%p1001_p5), %s1053_s15, 32, %s1055_s17, %s227_s19  }
  0x41   : > { %s663_s20 = sshll.u32 %s916_s24, 6  ;;  %s248_s12 = scalar_lea.vmem [#allocation7], %s662_s18 }
  0x42   : > { %s1084_s14 = scalar_lea.hbm %s1205_s4, %s663_s20  ;;  %s254_s0 = sshll.u32 %s248_s12, 4  ;;  %s1088_s0 = int_to_ptr.vmem [resolvable:$true] %s254_s0 }
  0x43   : > { %s245_s16 = scalar_lea.sflag [#allocation8], %s1046_s28  ;;  %s814_s26 = scalar_lea.hbm %s1084_s14, 512 }
  0x44   : > { %p815_p4 = scmp.ne.s32.totalorder %s1084_s14, %s814_s26  ;;  %s818_s19 = scalar_lea.hbm %s1205_s4, 1024 }
  0x45   : > { %p819_p12 = scmp.lt.u32.totalorder %s1084_s14, %s1205_s4  ;;  %p820_p1 = scmp.lt.u32.totalorder %s818_s19, %s814_s26 }
  0x46   : > { %p816_p6 = pnand %p815_p4, %p1001_p5  ;;  %p822_p9 = scmp.lt.u32.totalorder %s814_s26, %s1084_s14 }
  0x47   : > { %p821_p3 = por %p820_p1, %p819_p12 }
  0x48   : > { %p817_p11 = pneg %p816_p6 }
  0x49   : > { %p823_p10 = por %p822_p9, %p821_p3 }
  0x4b   : > { %p824_p2 = pnand %p823_p10, %p817_p11 }
  0x4d   : > { %827 = shalt.err (!%p824_p2)
}
  0x4e   : > { %s828_s18 = scalar_lea.vmem %s1088_s0, 512  ;;  %s920_s13 = smov [#allocation7]  }
  0x4f   : > { %p829_p0 = scmp.ne.s32.totalorder %s1088_s0, %s828_s18  ;;  %s832_s12 = sshll.u32 %s920_s13, 4  ;;  %s833_s12 = int_to_ptr.vmem [resolvable:$false] %s832_s12 }
  0x50   : > { %s834_s15 = scalar_lea.vmem %s833_s12, 1024  ;;  %p835_p4 = scmp.lt.s32.totalorder %s1088_s0, %s833_s12 }
  0x51   : > { %p830_p7 = pnand %p829_p0, %p1001_p5  ;;  %p836_p6 = scmp.lt.s32.totalorder %s834_s15, %s828_s18 }
  0x53   : > { %p831_p8 = pneg %p830_p7  ;;  %p837_p12 = por %p836_p6, %p835_p4 }
  0x55   : > { %p838_p1 = pnand %p837_p12, %p831_p8 }
  0x57   : > { %841 = shalt.err (!%p838_p1)
}
  0x58   : > { %s921_s26 = smov 128   ;;  %s922_s17 = smov 64  }
  0x59   : > { %s923_s19 = smov 4   ;;  %263 = sbr.rel (!%p1001_p5) target bundleno = 96 (0x60), region = 40 }
  0x5a   : > { %712 = dma.hbm_to_vmem [thread:$0]  (%p1001_p5), %s1084_s14, 512, %s1088_s0, %s245_s16, %s921_s26, %s922_s17, %s923_s19  }
  0x5b   : > { %s664_s20 = sshll.u32 (%p1001_p5), %s1046_s28, 3  ;;  %s665_s29 = sshll.u32 (%p1001_p5), %s916_s24, 2 }
  0x5c   : > { %s269_s12 = scalar_lea.vmem (%p1001_p5), %s1206_s5, %s665_s29  ;;  %s267_s15 = scalar_lea.vmem (%p1001_p5), [#allocation9], %s664_s20 }
  0x5d   : > { %v285_v0 = vld [vmem:[%s269_s12] sm:$0xf] (%p1001_p5)  ;;  %v287_v1 = vld [vmem:[%s269_s12 + $0x8] sm:$0xf] (%p1001_p5) }
  0x5e   : > { %286 = vst [vmem:[%s267_s15] sm:$0xf] (%p1001_p5), %v285_v0  ;;  %288 = vst [vmem:[%s267_s15 + $0x4] sm:$0xf] (%p1001_p5), %v287_v1 }
  0x60 PF: > { %318 = sbr.rel (%p1022_p13) target bundleno = 363 (0x16b), region = 81  ;;  %p1219_p5 = scmp.eq.s32.totalorder (!%p1022_p13), %s983_s25, 0 }
  0x67   : > { %887 = dma.done.wait (%p1219_p5), [#allocation5], 16   ;;  %p1220_p11 = pmov %p1219_p5 }
  0x68   : > { %s1128_s7 = sand.u32 1, %s908_s22   ;;  %p1221_p3 = scmp.ne.s32.totalorder %s1214_s8, 0 }
  0x69   : > { %889 = vsyncadd (%p1220_p11), [#allocation5], 4294967280  ;;  %s668_s28 = sshll.u32 %s1128_s7, 1  ;;  %s325_s14 = scalar_lea.sflag [#allocation3], %s1128_s7 }
  0x6a   : > { %s1132_s0 = scalar_lea.vmem [#allocation6], %s668_s28 }
  0x6b   : > { %891 = dma.done.wait (%p1221_p3), %s325_s14, 32  }
  0x6c   : > { %893 = vsyncadd (%p1221_p3), %s325_s14, 4294967264  ;;  %s669_s11 = sshll.u32 %s1128_s7, 5  ;;  %s334_s16 = scalar_lea.sflag [#allocation8], %s1128_s7 }
  0x6d   : > { %s337_s26 = scalar_lea.vmem [#allocation7], %s669_s11 }
  0x6e   : > { %895 = dma.done.wait (%p1221_p3), %s334_s16, 512  }
  0x6f   : > { %897 = vsyncadd (%p1221_p3), %s334_s16, 4294966784  ;;  %s670_s17 = sshll.u32 %s1128_s7, 3 }
  0x70   : > { %s345_s19 = scalar_lea.vmem [#allocation9], %s670_s17 }
  0x71   : > { %349 = sfence }
  0x72   : > { %v768_v2 = vld [vmem:[%s337_s26] sm:$0xff]   ;;  %v924_v3 = vmov 0.0   ;;  %v769_v4 = vld [vmem:[%s337_s26 + $0x8] sm:$0xff]   ;;  %vm925_vm0 = vmmov 0   ;;  %vm477_vm1 = vcmask 130048   ;;  %v770_v7 = vld [vmem:[%s337_s26 + $0x10] sm:$0xff]  }
  0x73   : > { %689 = vmatprep.subr.bf16.mxu1 %v924_v3  ;;  %701 = vmatprep.subr.bf16.mxu0 %v924_v3  ;;  %v771_v5 = vld [vmem:[%s345_s19] sm:$0xff]   ;;  %v772_v8 = vld [vmem:[%s337_s26 + $0x18] sm:$0xff]   ;;  %vm423_vm2 = vcmask 523264   ;;  %s384_s13 = sld [smem:[#allocation2]]  ;;  %s671_s12 = sld [smem:[#allocation2 + $0x1]] }
  0x74   : > { %690 = vmatpush3.bf16.msra.mxu1 %v768_v2  ;;  %703 = vmatprep.mubr.msk.bf16.mxu0 %vm925_vm0, %v924_v3  ;;  %v468_v6 = vld [vmem:[%s1204_s3] sm:$0x1]  ;;  %v383_v10 = vld [vmem:[%s1132_s0] sm:$0x3]  ;;  %s679_s15 = sshll.u32 %s983_s25, 4  ;;  %s381_s28 = scalar_lea.vmem [#allocation10], %s1128_s7 }
  0x75   : > { %691 = vmatprep.subr.bf16.mxu1 %v924_v3  ;;  %697 = vmatprep.mubr.msk.bf16.mxu1 %vm925_vm0, %v924_v3  ;;  %v390_v9 = vld [vmem:[%s1203_s2] sm:$0x1]  ;;  %s537_s14 = sshll.u32 %s381_s28, 4  ;;  %s1157_s16 = scalar_lea.hbm %s1207_s6, %s679_s15  ;;  %s1159_s14 = int_to_ptr.vmem [resolvable:$true] %s537_s14 }
  0x76   : > { %702 = vmatpush3.bf16.msra.mxu0 %v771_v5  ;;  %s525_s26 = scalar_lea.sflag [#allocation4], %s1128_s7  ;;  %s842_s17 = scalar_lea.vmem %s1159_s14, 16 }
  0x77   : > { %p843_p13 = scmp.ne.s32.totalorder %s1159_s14, %s842_s17  ;;  %p1222_p9 = scmp.ne.s32.totalorder %s1215_s9, 0 }
  0x78   : > { %692 = vmatpush3.bf16.msra.mxu1 %v769_v4  ;;  %s926_s25 = smov [#allocation10]  }
  0x79   : > { %693 = vmatprep.subr.bf16.mxu1 %v924_v3  ;;  %704 = vmatmul.mubr.msk.bf16.vlgmr.msra.gmra.mrb[0].mxu0 %vm477_vm1, %v468_v6  ;;  %v385_v11 = vstv %s384_s13  ;;  %v388_v16 = vstv %s671_s12  ;;  %p844_p10 = pnand %p843_p13, %p1222_p9  ;;  %s846_s19 = sshll.u32 %s926_s25, 4  ;;  %s847_s19 = int_to_ptr.vmem [resolvable:$false] %s846_s19 }
  0x7a   : > { %v386_v14 = vmul.f32 %v385_v11, %v383_v10  ;;  %s848_s20 = scalar_lea.vmem %s847_s19, 32  ;;  %p849_p0 = scmp.lt.s32.totalorder %s1159_s14, %s847_s19 }
  0x7b   : > { %p845_p2 = pneg %p844_p10  ;;  %p850_p7 = scmp.lt.s32.totalorder %s848_s20, %s842_s17 }
  0x7c   : > { %694 = vmatpush3.bf16.msra.mxu1 %v770_v7  ;;  %v389_v18 = vadd.f32 %v388_v16, %v386_v14 }
  0x7d   : > { %695 = vmatprep.subr.bf16.mxu1 %v924_v3  ;;  %p851_p8 = por %p850_p7, %p849_p0 }
  0x7f   : > { %p852_p4 = pnand %p851_p8, %p845_p2 }
  0x80   : > { %696 = vmatpush3.bf16.msra.mxu1 %v772_v8 }
  0x83   : > { %698 = vmatmul.mubr.msk.bf16.vlgmr.msra.gmra.mrb[0].mxu1 %vm423_vm2, %v390_v9 }
 0x14c   : > { %v515_v12 = vpop.f32.mrb[0].mxu0 }
 0x14d   : > { %v705_v13 = vpop.f32.mrb[1].mxu0 }
 0x14e   : > { %v518_v15 = vpop.f32.mrb[2].mxu0 }
 0x14f   : > { %v706_v17 = vpop.f32.mrb[3].mxu0 }
 0x156   : > { %v461_v19 = vpop.f32.mrb[0].mxu1 }
 0x157   : > { %v467_v20 = vadd.f32 %v461_v19, %v389_v18  ;;  %v699_v21 = vpop.f32.mrb[1].mxu1 }
 0x158   : > { %v464_v22 = vpop.f32.mrb[2].mxu1 }
 0x159   : > { %v521_v23 = vadd.f32 %v515_v12, %v467_v20  ;;  %v700_v24 = vpop.f32.mrb[3].mxu1 }
 0x15b   : > { %v522_v25 = vpack.c.bf16 %v521_v23, %v521_v23 }
 0x15d   : > { %523 = vst [vmem:[%s381_s28] sm:$0x1] %v522_v25 }
 0x15e   : > { %855 = shalt.err (!%p852_p4)
}
 0x15f   : > { %s856_s7 = scalar_lea.hbm %s1157_s16, 16  ;;  %s860_s18 = scalar_lea.hbm %s1207_s6, 32 }
 0x160   : > { %p857_p6 = scmp.ne.s32.totalorder %s1157_s16, %s856_s7  ;;  %p861_p5 = scmp.lt.u32.totalorder %s1157_s16, %s1207_s6 }
 0x161   : > { %p862_p11 = scmp.lt.u32.totalorder %s860_s18, %s856_s7  ;;  %p864_p13 = scmp.lt.u32.totalorder %s856_s7, %s1157_s16 }
 0x162   : > { %p858_p12 = pnand %p857_p6, %p1222_p9 }
 0x163   : > { %p863_p3 = por %p862_p11, %p861_p5 }
 0x164   : > { %p859_p1 = pneg %p858_p12 }
 0x165   : > { %p865_p10 = por %p864_p13, %p863_p3 }
 0x167   : > { %p866_p2 = pnand %p865_p10, %p859_p1 }
 0x169   : > { %869 = shalt.err (!%p866_p2)
}
 0x16a   : > { %717 = dma.vmem_to_hbm [thread:$0]  (%p1222_p9), %s1159_s14, 16, %s1157_s16, %s525_s26  }
 0x16b PF: > { %s549_s15 = sand.u32 1, %s904_s21   ;;  %p1223_p0 = scmp.ne.s32.totalorder %s1216_s10, 0 }
 0x16c   : > { %p1224_p7 = scmp.ge.s32.totalorder %s916_s24, 2  ;;  %s550_s28 = scalar_lea.sflag [#allocation4], %s549_s15 }
 0x16e   : > { %p724_p8 = pnand %p1224_p7, %p1223_p0 }
 0x170   : > { %899 = dma.done.wait (!%p724_p8), %s550_s28, 16  }
 0x171   : > { %901 = vsyncadd (!%p724_p8), %s550_s28, 4294967280  ;;  %p23_p4 = scmp.ge.s32.totalorder %s987_s27, 4   ;;  %s1225_s21 = smov %s908_s22 }
 0x172   : > { %s1226_s22 = smov %s912_s23  ;;  %s1227_s23 = smov %s999_s30 }
 0x173   : > { %s1228_s24 = smov %s987_s27  ;;  %25 = sbr.rel (!%p23_p4) target bundleno = 10 (0xa), region = 156 }
 0x17a   :  { %554 = vsyncpa [#allocation3], 1 }
 0x17b   :  { %556 = vsyncpa [#allocation3 + $0x1], 1 }
 0x17c   :  { %557 = vsyncpa [#allocation8], 1 }
 0x17d   :  { %559 = vsyncpa [#allocation8 + $0x1], 1 }
 0x17e   :  { %560 = vsyncpa [#allocation4], 1 }
 0x17f   :  { %562 = vsyncpa [#allocation4 + $0x1], 1 }
 0x180   :  { %563 = vsyncpa [#allocation5], 1 }
 0x181   :  { %565 = vsyncpa [#allocation5 + $0x1], 1 }

</bundles_post_ra>
